<compile_context>
chip_gen: v7x
topology: tpu7x:2x2x1
jax: 0.10.0
libtpu: 0.0.40
codegen_flags: <defaults>
</compile_context>

<pallas_src>
import functools

import jax
import jax.numpy as jnp
import numpy as np
from jax.experimental import pallas as pl
from jax.experimental.pallas import tpu as pltpu


def _ssn_kernel(x_ref, gamma_ref, beta_ref, o_ref, *, eps, n_elems):
    # x_ref / o_ref: (N, G, Fs*T) block of G sub-spectral groups.
    # gamma_ref / beta_ref: (1, G, 1) affine params for those groups.
    x = x_ref[...].astype(jnp.float32)

    # Per-group mean over batch + sub-band freq + time (torch: x.mean([0,2,3])).
    mean = jnp.sum(x, axis=(0, 2), keepdims=True) * (1.0 / n_elems)        # (1, G, 1)
    diff = x - mean
    # torch.var default is unbiased (divide by n - 1).
    var = jnp.sum(diff * diff, axis=(0, 2), keepdims=True) * (1.0 / (n_elems - 1.0))

    inv_std = jax.lax.rsqrt(var + eps)                                      # (1, G, 1)
    scale = gamma_ref[...].astype(jnp.float32) * inv_std                    # (1, G, 1)
    shift = beta_ref[...].astype(jnp.float32) - mean * scale                # (1, G, 1)

    # Single fused multiply-add pass over the block.
    o_ref[...] = (x * scale + shift).astype(o_ref.dtype)


def _pick_group_block(CS, per_group_bytes, budget_bytes, max_groups=None):
    """Pick G = groups per grid step: a divisor of CS, preferring multiples of 8
    (f32 sublane count) or CS itself, under a per-block VMEM byte budget."""
    divisors = [d for d in range(1, CS + 1) if CS % d == 0]
    if max_groups is not None:
        divisors = [d for d in divisors if d <= max_groups] or [1]
    fits = lambda d: d * per_group_bytes <= budget_bytes
    aligned = [d for d in divisors if (d % 8 == 0 or d == CS) and fits(d)]
    if aligned:
        return max(aligned)
    any_fit = [d for d in divisors if fits(d)]
    if any_fit:
        return max(any_fit)
    # Even one group exceeds the budget; fall back to a single group per step.
    # For truly huge per-group slabs a row-tiled two-pass (sum/sumsq accumulator
    # + pl.when finalize) variant and a raised vmem_limit_bytes would be needed.
    return min(divisors)


def sub_spectral_norm(x, gamma, beta, S=5, eps=1e-5, *,
                      max_groups_per_block=None, block_budget_bytes=2 << 20):
    """x: (N, C, F, T); gamma, beta: (C*S,) (or any shape reshapable to it)."""
    N, C, F, T = x.shape
    assert F % S == 0, "F must be divisible by S"
    Fs = F // S
    CS = C * S
    L = Fs * T
    n_elems = N * Fs * T
    assert n_elems > 1, "need more than one element per group for unbiased var"

    # Pure metadata reshapes (no transpose, no extra HBM traffic):
    # (N, C, F, T) -> (N, C*S, F//S, T) -> (N, C*S, Fs*T)
    xr = x.reshape(N, CS, L)
    g = jnp.asarray(gamma, jnp.float32).reshape(1, CS, 1)
    b = jnp.asarray(beta, jnp.float32).reshape(1, CS, 1)

    per_group_bytes = N * L * x.dtype.itemsize
    G = _pick_group_block(CS, per_group_bytes, block_budget_bytes,
                          max_groups_per_block)
    grid = (CS // G,)

    kernel = functools.partial(_ssn_kernel, eps=float(eps), n_elems=float(n_elems))

    cost = pl.CostEstimate(
        flops=6 * x.size,                                  # sums + FMA passes
        transcendentals=CS,                                # one rsqrt per group
        bytes_accessed=2 * x.size * x.dtype.itemsize + 2 * CS * 4,
    )

    out = pl.pallas_call(
        kernel,
        out_shape=jax.ShapeDtypeStruct((N, CS, L), x.dtype),
        grid=grid,
        in_specs=[
            pl.BlockSpec((N, G, L), lambda i: (0, i, 0)),   # x block (lane-dense)
            pl.BlockSpec((1, G, 1), lambda i: (0, i, 0)),   # gamma
            pl.BlockSpec((1, G, 1), lambda i: (0, i, 0)),   # beta
        ],
        out_specs=pl.BlockSpec((N, G, L), lambda i: (0, i, 0)),
        compiler_params=pltpu.CompilerParams(
            dimension_semantics=("parallel",)),             # megacore on v7x
        cost_estimate=cost,
    )(xr, g, b)

    # (N, C*S, Fs*T) -> (N, C, F, T): again a pure metadata reshape.
    return out.reshape(N, C, F, T)


def _reference(x, gamma, beta, S=5, eps=1e-5):
    N, C, F, T = x.shape
    CS = C * S
    xr = x.reshape(N, CS, F // S, T).astype(jnp.float32)
    mean = xr.mean(axis=(0, 2, 3), keepdims=True)
    n = N * (F // S) * T
    var = jnp.sum((xr - mean) ** 2, axis=(0, 2, 3), keepdims=True) / (n - 1)
    g = jnp.reshape(jnp.asarray(gamma, jnp.float32), (1, CS, 1, 1))
    b = jnp.reshape(jnp.asarray(beta, jnp.float32), (1, CS, 1, 1))
    y = g * (xr - mean) / jnp.sqrt(var + eps) + b
    return y.reshape(N, C, F, T).astype(x.dtype)


if __name__ == "__main__":
    # Small shapes: N=2, C=8, S=5, F=20 (divisible by S), T=32  ->  Fs*T = 128.
    N, C, S, F, T = 2, 8, 5, 20, 32
    CS = C * S
    eps = 1e-5

    key = jax.random.PRNGKey(0)
    kx, kg, kb = jax.random.split(key, 3)
    x = jax.random.normal(kx, (N, C, F, T), dtype=jnp.float32)

    # Deterministic affine params; xavier_uniform_ bound for shape (1, CS, 1, 1):
    # fan_in = CS, fan_out = 1, bound = sqrt(6 / (fan_in + fan_out)).
    bound = float(np.sqrt(6.0 / (CS + 1)))
    gamma = jax.random.uniform(kg, (CS,), minval=-bound, maxval=bound, dtype=jnp.float32)
    beta = jax.random.uniform(kb, (CS,), minval=-bound, maxval=bound, dtype=jnp.float32)

    # max_groups_per_block=8 exercises a multi-step grid (CS=40 -> grid=(5,))
    # with G=8 groups per block (multiple of the f32 sublane count).
    out = sub_spectral_norm(x, gamma, beta, S=S, eps=eps, max_groups_per_block=8)
    out = jax.block_until_ready(out)

    ref = _reference(x, gamma, beta, S=S, eps=eps)
    np.testing.assert_allclose(np.asarray(out), np.asarray(ref), rtol=1e-5, atol=1e-5)

    print("KERNEL_OK")
</pallas_src>

<mosaic_0001>
module attributes {stable_mosaic.version = 11 : i64} {
  func.func @_ssn_kernel(%arg0: i32, %arg1: memref<2x8x128xf32, #tpu.memory_space<vmem>>, %arg2: memref<1x8x1xf32, #tpu.memory_space<vmem>>, %arg3: memref<1x8x1xf32, #tpu.memory_space<vmem>>, %arg4: memref<2x8x128xf32, #tpu.memory_space<vmem>>) attributes {dimension_semantics = [#tpu.dimension_semantics<parallel>], iteration_bounds = array<i64: 5>, scalar_prefetch = 0 : i64, scratch_operands = 0 : i64, tpu.core_type = #tpu.core_type<tc>, window_params = [{transform_indices = @transform_0, window_bounds = array<i64: 2, 8, 128>}, {transform_indices = @transform_1, window_bounds = array<i64: 1, 8, 1>}, {transform_indices = @transform_2, window_bounds = array<i64: 1, 8, 1>}, {transform_indices = @transform_3, window_bounds = array<i64: 2, 8, 128>}]} {
    %c0 = arith.constant 0 : index
    %c0_0 = arith.constant 0 : index
    %c0_1 = arith.constant 0 : index
    %0 = vector.load %arg1[%c0, %c0_0, %c0_1] : memref<2x8x128xf32, #tpu.memory_space<vmem>>, vector<2x8x128xf32>
    %cst = arith.constant dense<0.000000e+00> : vector<8xf32>
    %1 = vector.multi_reduction <add>, %0, %cst [0, 2] : vector<2x8x128xf32> to vector<8xf32>
    %2 = vector.shape_cast %1 : vector<8xf32> to vector<1x8x1xf32>
    %cst_2 = arith.constant 3.906250e-03 : f32
    %3 = vector.broadcast %cst_2 : f32 to vector<1x8x1xf32>
    %4 = arith.mulf %2, %3 : vector<1x8x1xf32>
    %5 = vector.broadcast %4 : vector<1x8x1xf32> to vector<2x8x128xf32>
    %6 = arith.subf %0, %5 : vector<2x8x128xf32>
    %7 = arith.mulf %6, %6 : vector<2x8x128xf32>
    %cst_3 = arith.constant dense<0.000000e+00> : vector<8xf32>
    %8 = vector.multi_reduction <add>, %7, %cst_3 [0, 2] : vector<2x8x128xf32> to vector<8xf32>
    %9 = vector.shape_cast %8 : vector<8xf32> to vector<1x8x1xf32>
    %cst_4 = arith.constant 0.00392156886 : f32
    %10 = vector.broadcast %cst_4 : f32 to vector<1x8x1xf32>
    %11 = arith.mulf %9, %10 : vector<1x8x1xf32>
    %cst_5 = arith.constant 9.99999974E-6 : f32
    %12 = vector.broadcast %cst_5 : f32 to vector<1x8x1xf32>
    %13 = arith.addf %11, %12 : vector<1x8x1xf32>
    %14 = math.rsqrt %13 : vector<1x8x1xf32>
    %c0_6 = arith.constant 0 : index
    %c0_7 = arith.constant 0 : index
    %c0_8 = arith.constant 0 : index
    %15 = vector.load %arg2[%c0_6, %c0_7, %c0_8] : memref<1x8x1xf32, #tpu.memory_space<vmem>>, vector<1x8x1xf32>
    %16 = arith.mulf %15, %14 : vector<1x8x1xf32>
    %c0_9 = arith.constant 0 : index
    %c0_10 = arith.constant 0 : index
    %c0_11 = arith.constant 0 : index
    %17 = vector.load %arg3[%c0_9, %c0_10, %c0_11] : memref<1x8x1xf32, #tpu.memory_space<vmem>>, vector<1x8x1xf32>
    %18 = arith.mulf %4, %16 : vector<1x8x1xf32>
    %19 = arith.subf %17, %18 : vector<1x8x1xf32>
    %20 = vector.broadcast %16 : vector<1x8x1xf32> to vector<2x8x128xf32>
    %21 = arith.mulf %0, %20 : vector<2x8x128xf32>
    %22 = vector.broadcast %19 : vector<1x8x1xf32> to vector<2x8x128xf32>
    %23 = arith.addf %21, %22 : vector<2x8x128xf32>
    %c0_12 = arith.constant 0 : index
    %c0_13 = arith.constant 0 : index
    %c0_14 = arith.constant 0 : index
    %24 = vector.load %arg4[%c0_12, %c0_13, %c0_14] : memref<2x8x128xf32, #tpu.memory_space<vmem>>, vector<2x8x128xf32>
    tpu.vector_store %arg4[%c0_12, %c0_13, %c0_14], %23 {strides = array<i32>} : memref<2x8x128xf32, #tpu.memory_space<vmem>>, vector<2x8x128xf32>,
    return
  }
  func.func @transform_0(%arg0: i32) -> (i32, i32, i32) {
    %c0_i32 = arith.constant 0 : i32
    %c0_i32_0 = arith.constant 0 : i32
    %c0_i32_1 = arith.constant 0 : i32
    return %c0_i32, %arg0, %c0_i32_0 : i32, i32, i32
  }
  func.func @transform_1(%arg0: i32) -> (i32, i32, i32) {
    %c0_i32 = arith.constant 0 : i32
    %c0_i32_0 = arith.constant 0 : i32
    %c0_i32_1 = arith.constant 0 : i32
    return %c0_i32, %arg0, %c0_i32_0 : i32, i32, i32
  }
  func.func @transform_2(%arg0: i32) -> (i32, i32, i32) {
    %c0_i32 = arith.constant 0 : i32
    %c0_i32_0 = arith.constant 0 : i32
    %c0_i32_1 = arith.constant 0 : i32
    return %c0_i32, %arg0, %c0_i32_0 : i32, i32, i32
  }
  func.func @transform_3(%arg0: i32) -> (i32, i32, i32) {
    %c0_i32 = arith.constant 0 : i32
    %c0_i32_0 = arith.constant 0 : i32
    %c0_i32_1 = arith.constant 0 : i32
    return %c0_i32, %arg0, %c0_i32_0 : i32, i32, i32
  }
}

</mosaic_0001>

<bundles_post_ra>
// kernel: tpu_custom_call.1
= control target key start
LH: loop header
LB: loop body
LE: loop exit
PB: predicated region body
PF: predicated region fallthrough
CT: control target
= control target key end

     0   :  { %8 = vsyncpa [#allocation4], 0  ;;  %s654_s0 = inlined_call_operand.vmem [shape: f32[2,40,128], index: 0, kind: input, shape index: {}]   ;;  %s655_s1 = inlined_call_operand.vmem [shape: f32[1,40,1], index: 1, kind: input, shape index: {}]   ;;  %s656_s2 = inlined_call_operand.vmem [shape: f32[1,40,1], index: 2, kind: input, shape index: {}]   ;;  %s657_s3 = inlined_call_operand.hbm [shape: f32[2,40,128], index: 3, kind: output, shape index: {}]  }
   0x1   :  { %10 = vsyncpa [#allocation4 + $0x1], 0  ;;  %s533_s12 = smov 0   ;;  %s535_s13 = smov 0  }
   0x2   :  { %s537_s14 = smov 0   ;;  %s539_s15 = smov 0  }
   0x3 LB: > { %s554_s16 = sadd.s32 4294967295, %s506_s15   ;;  %s383_s17 = sadd.s32 4294967294, %s506_s15   ;;  %s506_s15 = sphi %s539_s15, %s663_s15   ;;  %s502_s14 = sphi %s537_s14, %s662_s14   ;;  %s498_s13 = sphi %s535_s13, %s661_s13   ;;  %s494_s12 = sphi %s533_s12, %s660_s12  }
   0x4   : > { %s558_s18 = sadd.s32 1, %s506_s15   ;;  %s23_s19 = sadd.s32 1, %s502_s14 }
   0x5   : > { %s20_s20 = ssub.s32 %s506_s15, %s558_s18  ;;  %p30_p0 = scmp.ne.s32.totalorder %s502_s14, %s498_s13 }
   0x6   : > { %p21_p1 = scmp.eq.s32.totalorder %s20_s20, 0  ;;  %p31_p2 = scmp.eq.s32.totalorder %s506_s15, 0 }
   0x7   : > { %p112_p3 = scmp.eq.s32.totalorder %s554_s16, 4  ;;  %p117_p4 = scmp.ne.s32.totalorder %s498_s13, %s494_s12 }
   0x8   : > { %s570_s21 = scalar_select %p21_p1, %s502_s14, %s23_s19  }
   0x9   : > { %p32_p5 = por %p31_p2, %p30_p0  ;;  %p572_p6 = por %p112_p3, %p30_p0 }
   0xa   : > { %p118_p7 = scmp.eq.s32.totalorder %s383_s17, 4  ;;  %p385_p9 = scmp.ge.s32.totalorder %s506_s15, 5 }
   0xc   : > { %p576_p8 = por %p118_p7, %p117_p4  ;;  %134 = sbr.rel (%p385_p9) target bundleno = 26 (0x1a), region = 16 }
  0x13   : > { %137 = sbr.rel (!%p32_p5) target bundleno = 26 (0x1a), region = 20  ;;  %s139_s24 = sand.u32 (%p32_p5), 1, %s502_s14  }
  0x14   : > { %s387_s25 = sshll.u32 (%p32_p5), %s506_s15, 3  ;;  %s386_s26 = sshll.u32 (%p32_p5), %s139_s24, 4 }
  0x15   : > { %s143_s29 = scalar_lea.vmem (%p32_p5), %s654_s0, %s387_s25  ;;  %s141_s30 = scalar_lea.vmem (%p32_p5), [#allocation2], %s386_s26 }
  0x16   : > { %v173_v0 = vld [vmem:[%s143_s29] sm:$0xff] (%p32_p5)  ;;  %v175_v1 = vld [vmem:[%s143_s29 + $0x28] sm:$0xff] (%p32_p5) }
  0x17   : > { %174 = vst [vmem:[%s141_s30] sm:$0xff] (%p32_p5), %v173_v0  ;;  %176 = vst [vmem:[%s141_s30 + $0x8] sm:$0xff] (%p32_p5), %v175_v1 }
  0x1a PF: > { %p388_p10 = scmp.ge.s32.totalorder %s506_s15, 1  ;;  %p195_p11 = scmp.lt.s32.totalorder %s506_s15, 6 }
  0x1c   : > { %p196_p12 = pnand %p388_p10, %p195_p11 }
  0x1d   : > { %s202_s4 = sand.u32 (!%p196_p12), 1, %s498_s13   ;;  %v508_v12 = vmov (!%p196_p12), 0   ;;  %p233_p13 = scmp.lt.s32.totalorder (!%p196_p12), %s554_s16, 4 }
  0x1e   : > { %199 = sbr.rel (%p196_p12) target bundleno = 494 (0x1ee), region = 66  ;;  %s591_s5 = sshll.u32 (!%p196_p12), %s202_s4, 4  ;;  %440 = vset.pattern.permute.xlu1 (!%p196_p12), %v508_v12  ;;  %441 = vset.pattern.permute.xlu0 (!%p196_p12), %v508_v12 }
  0x1f   : > { %s204_s6 = scalar_lea.vmem (!%p196_p12), [#allocation2], %s591_s5  ;;  %s232_s24 = scalar_lea.vmem (!%p196_p12), [#allocation3], %s591_s5 }
  0x20   : > { %v241_v2 = vld [vmem:[%s204_s6] sm:$0xff] (!%p196_p12)  ;;  %v242_v3 = vld [vmem:[%s204_s6 + $0x8] sm:$0xff] (!%p196_p12)  ;;  %s291_s25 = sshll.u32 (!%p196_p12), %s232_s24, 4  ;;  %s394_s26 = sshll.u32 (!%p196_p12), %s554_s16, 7  ;;  %s604_s25 = int_to_ptr.vmem [resolvable:$true] %s291_s25 }
  0x21   : > { %v243_v4 = vadd.f32 (!%p196_p12), %v242_v3, %v241_v2  ;;  %s609_s29 = scalar_lea.hbm (!%p196_p12), %s657_s3, %s394_s26  ;;  %s613_s30 = scalar_lea.sflag (!%p196_p12), [#allocation4], %s202_s4 }
  0x22   : > { %s509_s5 = smov (!%p196_p12), [#allocation3]  }
  0x23   : > { %244 = vadd.xlane.f32.xlu0 (!%p196_p12), %v243_v4  ;;  %s448_s6 = sshll.u32 (!%p196_p12), %s509_s5, 4  ;;  %s449_s6 = int_to_ptr.vmem [resolvable:$false] %s448_s6 }
  0x24   : > { %p451_p3 = scmp.lt.s32.totalorder (!%p196_p12), %s604_s25, %s449_s6 }
  0x25   : > { %s234_s7 = scalar_select %p233_p13, %s554_s16, 4 }
  0x26   : > { %s444_s16 = scalar_lea.vmem %s604_s25, 256 }
  0x27   : > { %s391_s8 = sshll.u32 %s234_s7, 3  ;;  %p445_p0 = scmp.ne.s32.totalorder %s604_s25, %s444_s16 }
  0x28   : > { %s236_s11 = scalar_lea.vmem %s655_s1, %s391_s8  ;;  %s240_s20 = scalar_lea.vmem %s656_s2, %s391_s8 }
  0x29   : > { %v257_v16 = vld [vmem:[%s236_s11] sm:$0xff]  ;;  %p446_p1 = pnand %p445_p0, %p572_p6  ;;  %s450_s7 = scalar_lea.vmem %s449_s6, 512 }
  0x2a   : > { %v259_v19 = vld [vmem:[%s240_s20] sm:$0xff]  ;;  %p452_p4 = scmp.lt.s32.totalorder %s450_s7, %s444_s16 }
  0x2b   : > { %p447_p2 = pneg %p446_p1 }
  0x2c   : > { %p453_p5 = por %p452_p4, %p451_p3 }
  0x2e   : > { %p454_p7 = pnand %p453_p5, %p447_p2 }
  0xb0   : > { %v245_v5 = vpop.xlane.xlu0 %244 }
  0xb1   : > { %v246_v6 = vmul.f32 0.00390625, %v245_v5 }
  0xb3   : > { %v247_v7 = vsub.f32 %v241_v2, %v246_v6  ;;  %v248_v8 = vsub.f32 %v242_v3, %v246_v6 }
  0xb5   : > { %v249_v9 = vmul.f32 %v247_v7, %v247_v7  ;;  %v250_v10 = vmul.f32 %v248_v8, %v248_v8 }
  0xb7   : > { %v251_v11 = vadd.f32 %v250_v10, %v249_v9 }
  0xb9   : > { %252 = vadd.xlane.f32.xlu0 %v251_v11 }
 0x146   : > { %v253_v13 = vpop.xlane.xlu0 %252 }
 0x147   : > { %v254_v14 = vmul.f32 0.003921569, %v253_v13 }
 0x149   : > { %v255_v15 = vadd.f32 1e-05, %v254_v14 }
 0x14b   : > { %442 = vrsqrt.f32 %v255_v15 }
 0x155   : > { %v443_v17 = vpop.eup %442 }
 0x156   : > { %v258_v18 = vmul.f32 %v443_v17, %v257_v16 }
 0x158   : > { %264 = vperm.xlu1 %440, %v258_v18   ;;  %v260_v20 = vmul.f32 %v258_v18, %v246_v6 }
 0x15a   : > { %v261_v21 = vsub.f32 %v259_v19, %v260_v20 }
 0x15c   : > { %271 = vperm.xlu1 %440, %v261_v21  }
 0x1d7   : > { %v265_v22 = vpop.permute.xlu1 %264 }
 0x1d8   : > { %v267_v23 = vmul.f32 %v265_v22, %v241_v2  ;;  %v268_v24 = vmul.f32 %v265_v22, %v242_v3 }
 0x1db   : > { %v272_v25 = vpop.permute.xlu1 %271 }
 0x1dc   : > { %v274_v26 = vadd.f32 %v272_v25, %v267_v23  ;;  %v275_v27 = vadd.f32 %v272_v25, %v268_v24 }
 0x1de   : > { %276 = vst [vmem:[%s232_s24] sm:$0xff] %v274_v26  ;;  %277 = vst [vmem:[%s232_s24 + $0x8] sm:$0xff] %v275_v27 }
 0x1df   : > { %457 = shalt.err (!%p454_p7)
}
 0x1e0   : > { %s458_s4 = scalar_lea.hbm %s609_s29, 256  ;;  %s462_s10 = scalar_lea.hbm %s657_s3, 1280 }
 0x1e1   : > { %p459_p9 = scmp.ne.s32.totalorder %s609_s29, %s458_s4  ;;  %p463_p12 = scmp.lt.u32.totalorder %s609_s29, %s657_s3 }
 0x1e2   : > { %p464_p13 = scmp.lt.u32.totalorder %s462_s10, %s458_s4  ;;  %p466_p1 = scmp.lt.u32.totalorder %s458_s4, %s609_s29 }
 0x1e3   : > { %p460_p10 = pnand %p459_p9, %p572_p6 }
 0x1e4   : > { %p465_p0 = por %p464_p13, %p463_p12 }
 0x1e5   : > { %p461_p11 = pneg %p460_p10 }
 0x1e6   : > { %p467_p2 = por %p466_p1, %p465_p0 }
 0x1e8   : > { %p468_p3 = pnand %p467_p2, %p461_p11 }
 0x1ea   : > { %471 = shalt.err (!%p468_p3)
}
 0x1eb   : > { %s510_s19 = smov 128   ;;  %s511_s20 = smov 640  }
 0x1ec   : > { %s512_s24 = smov 8  }
 0x1ed   : > { %397 = dma.vmem_to_hbm [thread:$0]  (%p572_p6), %s604_s25, 256, %s609_s29, %s613_s30, %s510_s19, %s511_s20, %s512_s24  }
 0x1ee PF: > { %p403_p4 = scmp.ge.s32.totalorder %s506_s15, 2  ;;  %s306_s26 = sand.u32 1, %s494_s12  }
 0x1ef   : > { %s307_s27 = scalar_lea.sflag [#allocation4], %s306_s26 }
 0x1f0   : > { %p400_p5 = pnand %p403_p4, %p576_p8 }
 0x1f2   : > { %489 = dma.done.wait (!%p400_p5), %s307_s27, 256  }
 0x1f3   : > { %491 = vsyncadd (!%p400_p5), %s307_s27, 4294967040  ;;  %p13_p7 = scmp.ge.s32.totalorder %s558_s18, 7   ;;  %s660_s12 = smov %s498_s13 }
 0x1f4   : > { %s661_s13 = smov %s502_s14  ;;  %s662_s14 = smov %s570_s21 }
 0x1f5   : > { %s663_s15 = smov %s558_s18  ;;  %15 = sbr.rel (!%p13_p7) target bundleno = 3 (0x3), region = 116 }
 0x1fc   :  { %312 = vsyncpa [#allocation4], 1 }
 0x1fd   :  { %314 = vsyncpa [#allocation4 + $0x1], 1 }

</bundles_post_ra>
